<compile_context>
chip_gen: v7x
topology: tpu7x:2x2x1
jax: 0.10.0
libtpu: 0.0.40
codegen_flags: <defaults>
</compile_context>

<pallas_src>
import math
from functools import partial

import jax
import jax.numpy as jnp
from jax.experimental import pallas as pl
from jax.experimental.pallas import tpu as pltpu

N_EMBD = 256                       # fixed by the module
MAX_SEQ_LEN = 64                   # module default is 1000; small here for the demo
SQRT_N_EMBD = math.sqrt(N_EMBD)    # == 16.0, trace-time constant

# Portable tiling policy (v5e / v6e / v7x):
_TARGET_BLOCK_BYTES = 4 * 1024 * 1024     # ~4 MiB of streamed x per grid step
_VMEM_LIMIT_BYTES = 48 * 1024 * 1024      # above 16/32 MiB scoped defaults, < v7x 64 MiB
_TILE_T_CANDIDATES = (4096, 2048, 1024, 512, 256, 128, 64, 32, 16, 8)


def build_position_table(max_seq_len=MAX_SEQ_LEN, n_embd=N_EMBD):
    # Faithful port of PositionalEncoder.__init__: `range(n_embd, 2)` never executes,
    # so the buffer stays all zeros.
    # TODO(synk): if the *intended* sinusoidal fill is ever desired, build the standard
    # sin/cos table here; the Pallas kernel below handles any table unchanged.
    return jnp.zeros((max_seq_len, n_embd), dtype=jnp.float32)


def pos_encoder_kernel(x_ref, pos_ref, o_ref, *, tile_t, scale):
    # x_ref / o_ref: (b_tile, tile_t, C) blocks.
    # pos_ref:       full (T, C) table, resident in VMEM (grid-invariant BlockSpec);
    #                slice the rows for this sequence tile.
    t = pl.program_id(1)
    start = pl.multiple_of(t * tile_t, tile_t)
    pos = pos_ref[pl.ds(start, tile_t), :]
    o_ref[...] = (x_ref[...] * scale + pos[None, :, :]).astype(o_ref.dtype)


def _choose_tiles(B, T, C, itemsize):
    """VMEM-budget-aware (b_tile, tile_t) selection."""
    sublane = {4: 8, 2: 16, 1: 32}.get(itemsize, 8)   # dtype-aware sublane packing
    row_bytes = C * itemsize

    # Sequence tile: largest sublane-aligned candidate dividing T within the budget;
    # full-axis fallback (a block equal to the full dim is always legal).
    tile_t = T
    for cand in _TILE_T_CANDIDATES:
        if cand % sublane:
            continue
        if cand <= T and T % cand == 0 and cand * row_bytes <= _TARGET_BLOCK_BYTES:
            tile_t = cand
            break

    # Batch tile: largest divisor of B keeping the x block near the per-step target,
    # so per-step VMEM never scales with the full batch.
    tile_bytes_per_b = max(1, tile_t * row_bytes)
    max_b = max(1, _TARGET_BLOCK_BYTES // tile_bytes_per_b)
    b_tile = 1
    for cand in range(min(B, max_b), 0, -1):
        if B % cand == 0:
            b_tile = cand
            break

    # Guarantee >= 2 grid steps when possible (keep v7x's second TensorCore busy).
    if (B // b_tile) * (T // tile_t) < 2:
        if b_tile > 1 and b_tile % 2 == 0:
            b_tile //= 2
        elif (tile_t % 2 == 0 and (tile_t // 2) % sublane == 0
              and T % (tile_t // 2) == 0):
            tile_t //= 2
        elif b_tile > 1:
            b_tile = 1
    return b_tile, tile_t


@jax.jit
def positional_encoder_forward(x, position):
    B, T, C = x.shape
    pos = position[:T, :].astype(x.dtype)        # == self.position[:seq_len, :]
    itemsize = jnp.dtype(x.dtype).itemsize
    b_tile, tile_t = _choose_tiles(B, T, C, itemsize)
    grid = (B // b_tile, T // tile_t)

    kernel = partial(pos_encoder_kernel, tile_t=tile_t, scale=SQRT_N_EMBD)

    cost = pl.CostEstimate(
        flops=2 * B * T * C,
        transcendentals=0,
        bytes_accessed=(2 * B * T * C + T * C) * itemsize,
    )

    return pl.pallas_call(
        kernel,
        out_shape=jax.ShapeDtypeStruct((B, T, C), x.dtype),
        grid_spec=pltpu.PrefetchScalarGridSpec(
            num_scalar_prefetch=0,
            grid=grid,
            in_specs=[
                pl.BlockSpec((b_tile, tile_t, C), lambda b, t: (b, t, 0)),
                # Full table, grid-invariant index_map -> DMA'd once, stays resident.
                pl.BlockSpec((T, C), lambda b, t: (0, 0)),
            ],
            out_specs=pl.BlockSpec((b_tile, tile_t, C), lambda b, t: (b, t, 0)),
        ),
        compiler_params=pltpu.CompilerParams(
            dimension_semantics=("parallel", "parallel"),
            vmem_limit_bytes=_VMEM_LIMIT_BYTES,
        ),
        cost_estimate=cost,
    )(x, pos)


def reference(x, position):
    T = x.shape[1]
    return x * SQRT_N_EMBD + position[:T, :]


if __name__ == "__main__":
    key = jax.random.PRNGKey(0)
    kx, kp = jax.random.split(key)

    B, T = 2, 16
    x = jax.random.normal(kx, (B, T, N_EMBD), jnp.float32)

    # Exact module semantics (zero table, as produced by the original __init__).
    position = build_position_table(MAX_SEQ_LEN, N_EMBD)
    out = jax.block_until_ready(positional_encoder_forward(x, position))
    ref = reference(x, position)
    assert out.shape == (B, T, N_EMBD)
    assert out.dtype == x.dtype
    assert jnp.allclose(out, ref, atol=1e-6, rtol=1e-6), (
        f"max abs diff {jnp.max(jnp.abs(out - ref))}")

    # Non-zero table: exercises the broadcast-add path (module semantics unchanged).
    pos_nz = jax.random.normal(kp, (MAX_SEQ_LEN, N_EMBD), jnp.float32)
    out2 = jax.block_until_ready(positional_encoder_forward(x, pos_nz))
    ref2 = reference(x, pos_nz)
    assert jnp.allclose(out2, ref2, atol=1e-5, rtol=1e-5), (
        f"max abs diff {jnp.max(jnp.abs(out2 - ref2))}")

    # bf16 activations: dtype-matched table, bf16 compute, explicit output cast.
    x_bf16 = x.astype(jnp.bfloat16)
    out3 = jax.block_until_ready(positional_encoder_forward(x_bf16, pos_nz))
    ref3 = (x_bf16.astype(jnp.float32) * SQRT_N_EMBD
            + pos_nz[:T].astype(jnp.bfloat16).astype(jnp.float32))
    assert out3.dtype == jnp.bfloat16
    assert jnp.allclose(out3.astype(jnp.float32), ref3, atol=5e-1, rtol=5e-2), (
        f"max abs diff {jnp.max(jnp.abs(out3.astype(jnp.float32) - ref3))}")

    print("KERNEL_OK")
</pallas_src>

<mosaic_0001>
module attributes {stable_mosaic.version = 11 : i64} {
  func.func @pos_encoder_kernel(%arg0: i32, %arg1: i32, %arg2: memref<1x16x256xf32, #tpu.memory_space<vmem>>, %arg3: memref<16x256xf32, #tpu.memory_space<vmem>>, %arg4: memref<1x16x256xf32, #tpu.memory_space<vmem>>) attributes {dimension_semantics = [#tpu.dimension_semantics<parallel>, #tpu.dimension_semantics<parallel>], iteration_bounds = array<i64: 2, 1>, scalar_prefetch = 0 : i64, scratch_operands = 0 : i64, tpu.core_type = #tpu.core_type<tc>, window_params = [{transform_indices = @transform_0, window_bounds = array<i64: 1, 16, 256>}, {pipeline_mode = #tpu.pipeline_mode<synchronous>, transform_indices = @transform_1, window_bounds = array<i64: 16, 256>}, {transform_indices = @transform_2, window_bounds = array<i64: 1, 16, 256>}]} {
    %c16_i32 = arith.constant 16 : i32
    %0 = arith.muli %arg1, %c16_i32 : i32
    %1 = tpu.assume_multiple %0, 16 : i32
    %2 = arith.index_cast %1 : i32 to index
    %c0 = arith.constant 0 : index
    %3 = vector.load %arg3[%2, %c0] : memref<16x256xf32, #tpu.memory_space<vmem>>, vector<16x256xf32>
    %c0_0 = arith.constant 0 : index
    %c0_1 = arith.constant 0 : index
    %c0_2 = arith.constant 0 : index
    %4 = vector.load %arg2[%c0_0, %c0_1, %c0_2] : memref<1x16x256xf32, #tpu.memory_space<vmem>>, vector<1x16x256xf32>
    %cst = arith.constant 1.600000e+01 : f32
    %5 = vector.broadcast %cst : f32 to vector<1x16x256xf32>
    %6 = arith.mulf %4, %5 : vector<1x16x256xf32>
    %7 = vector.shape_cast %3 : vector<16x256xf32> to vector<1x16x256xf32>
    %8 = arith.addf %6, %7 : vector<1x16x256xf32>
    %c0_3 = arith.constant 0 : index
    %c0_4 = arith.constant 0 : index
    %c0_5 = arith.constant 0 : index
    %9 = vector.load %arg4[%c0_3, %c0_4, %c0_5] : memref<1x16x256xf32, #tpu.memory_space<vmem>>, vector<1x16x256xf32>
    tpu.vector_store %arg4[%c0_3, %c0_4, %c0_5], %8 {strides = array<i32>} : memref<1x16x256xf32, #tpu.memory_space<vmem>>, vector<1x16x256xf32>,
    return
  }
  func.func @transform_0(%arg0: i32, %arg1: i32) -> (i32, i32, i32) {
    %c0_i32 = arith.constant 0 : i32
    %c0_i32_0 = arith.constant 0 : i32
    return %arg0, %arg1, %c0_i32 : i32, i32, i32
  }
  func.func @transform_1(%arg0: i32, %arg1: i32) -> (i32, i32) {
    %c0_i32 = arith.constant 0 : i32
    %c0_i32_0 = arith.constant 0 : i32
    %c0_i32_1 = arith.constant 0 : i32
    return %c0_i32, %c0_i32_0 : i32, i32
  }
  func.func @transform_2(%arg0: i32, %arg1: i32) -> (i32, i32, i32) {
    %c0_i32 = arith.constant 0 : i32
    %c0_i32_0 = arith.constant 0 : i32
    return %arg0, %arg1, %c0_i32 : i32, i32, i32
  }
}

</mosaic_0001>

<bundles_post_ra>
// kernel: positional_encoder_forward.1
= control target key start
LH: loop header
LB: loop body
LE: loop exit
PB: predicated region body
PF: predicated region fallthrough
CT: control target
= control target key end

     0   :  { %7 = vsyncpa [#allocation3], 0  ;;  %s720_s0 = inlined_call_operand.hbm [shape: f32[2,16,256], index: 0, kind: input, shape index: {}]   ;;  %s721_s1 = inlined_call_operand.vmem [shape: f32[16,256], index: 1, kind: input, shape index: {}]   ;;  %s722_s2 = inlined_call_operand.hbm [shape: f32[2,16,256], index: 2, kind: output, shape index: {}]  }
   0x1   :  { %9 = vsyncpa [#allocation3 + $0x1], 0 }
   0x2   :  { %10 = vsyncpa [#allocation4], 0 }
   0x3   :  { %12 = vsyncpa [#allocation4 + $0x1], 0  ;;  %s533_s9 = smov 0   ;;  %s535_s10 = smov 0  }
   0x4   :  { %s537_s11 = smov 0   ;;  %s539_s12 = smov 0  }
   0x5   :  { %s541_s13 = smov 0   ;;  %s543_s14 = smov 0  }
   0x6 LB: > { %s315_s15 = sadd.s32 4294967295, %s510_s14   ;;  %s316_s16 = sadd.s32 4294967294, %s510_s14   ;;  %s510_s14 = sphi %s543_s14, %s18_s14   ;;  %s506_s13 = sphi %s541_s13, %s737_s13   ;;  %s502_s12 = sphi %s539_s12, %s736_s12   ;;  %s498_s11 = sphi %s537_s11, %s735_s11   ;;  %s494_s10 = sphi %s535_s10, %s734_s10   ;;  %s490_s9 = sphi %s533_s9, %s733_s9  }
   0x7   : > { %s30_s17 = sadd.s32 1, %s506_s13  ;;  %s39_s18 = sadd.s32 1, %s498_s11 }
   0x8   : > { %p32_p0 = scmp.ge.s32.totalorder %s30_s17, 2  ;;  %p46_p1 = scmp.ne.s32.totalorder %s498_s11, %s494_s10 }
   0x9   : > { %p47_p2 = scmp.eq.s32.totalorder %s510_s14, 0  ;;  %p52_p3 = scmp.ne.s32.totalorder %s494_s10, %s490_s9 }
   0xa   : > { %s739_s17 = smov (%p32_p0, %s30_s17), 0  ;;  %p53_p5 = scmp.eq.s32.totalorder %s315_s15, 0 }
   0xb   : > { %p574_p4 = por %p47_p2, %p46_p1  ;;  %s34_s20 = ssub.s32 %s506_s13, %s739_s17 }
   0xc   : > { %p99_p6 = scmp.eq.s32.totalorder %s315_s15, 1  ;;  %p37_p7 = scmp.eq.s32.totalorder %s34_s20, 0 }
   0xd   : > { %p580_p8 = por %p53_p5, %p52_p3  ;;  %p105_p10 = scmp.eq.s32.totalorder %s316_s16, 1 }
   0xe   : > { %p584_p9 = por %p99_p6, %p46_p1  ;;  %p344_p13 = scmp.lt.s32.totalorder %s510_s14, 2 }
   0xf   : > { %s589_s23 = scalar_select %p37_p7, %s498_s11, %s39_s18  }
  0x10   : > { %s726_s22 = scalar_select %p584_p9, 1, 0 }
  0x11   : > { %p591_p11 = por %p105_p10, %p52_p3  ;;  %s128_s25 = sand.u32 1, %s498_s11  }
  0x12   : > { %s319_s26 = sshll.u32 %s128_s25, 5  ;;  %s330_s27 = sshll.u32 %s506_s13, 9 }
  0x13   : > { %s727_s24 = scalar_select %p591_p11, 1, 0 }
  0x14   : > { %s602_s30 = scalar_lea.hbm %s720_s0, %s330_s27  ;;  %s132_s3 = scalar_lea.vmem [#allocation2], %s319_s26 }
  0x15   : > { %s142_s4 = sshll.u32 %s132_s3, 4  ;;  %p608_p0 = pnand %p344_p13, %p574_p4  ;;  %s604_s4 = int_to_ptr.vmem [resolvable:$true] %s142_s4 }
  0x16   : > { %s613_s6 = scalar_lea.sflag [#allocation3], %s128_s25  ;;  %s398_s7 = scalar_lea.hbm %s602_s30, 512 }
  0x17   : > { %p399_p2 = scmp.ne.s32.totalorder %s602_s30, %s398_s7  ;;  %p400_p3 = pneg %p608_p0 }
  0x18   : > { %s403_s16 = scalar_lea.hbm %s720_s0, 1024  ;;  %p404_p4 = scmp.lt.u32.totalorder %s602_s30, %s720_s0 }
  0x19   : > { %p401_p5 = pnand %p400_p3, %p399_p2  ;;  %p405_p7 = scmp.lt.u32.totalorder %s403_s16, %s398_s7 }
  0x1a   : > { %p407_p13 = scmp.lt.u32.totalorder %s398_s7, %s602_s30 }
  0x1b   : > { %p402_p6 = pneg %p401_p5  ;;  %p406_p10 = por %p405_p7, %p404_p4 }
  0x1d   : > { %p408_p12 = por %p407_p13, %p406_p10 }
  0x1f   : > { %p409_p1 = pnand %p408_p12, %p402_p6 }
  0x21   : > { %412 = shalt.err (!%p409_p1)
}
  0x22   : > { %s413_s20 = scalar_lea.vmem %s604_s4, 512  ;;  %s512_s25 = smov [#allocation2]  }
  0x23   : > { %p414_p2 = scmp.ne.s32.totalorder %s604_s4, %s413_s20  ;;  %s418_s26 = sshll.u32 %s512_s25, 4  ;;  %s419_s26 = int_to_ptr.vmem [resolvable:$false] %s418_s26 }
  0x24   : > { %s420_s27 = scalar_lea.vmem %s419_s26, 1024  ;;  %p421_p9 = scmp.lt.s32.totalorder %s604_s4, %s419_s26 }
  0x25   : > { %p416_p5 = pnand %p414_p2, %p400_p3  ;;  %p422_p4 = scmp.lt.s32.totalorder %s420_s27, %s413_s20 }
  0x27   : > { %p417_p11 = pneg %p416_p5  ;;  %p423_p7 = por %p422_p4, %p421_p9 }
  0x29   : > { %p424_p10 = pnand %p423_p7, %p417_p11 }
  0x2b   : > { %427 = shalt.err (!%p424_p10)
}
  0x2c   : > { %s513_s28 = smov 256   ;;  %s514_s29 = smov 16  }
  0x2d   : > { %339 = dma.hbm_to_vmem [thread:$0]  (!%p608_p0), %s602_s30, 512, %s604_s4, %s613_s6, %s513_s28, %s513_s28, %s514_s29  }
  0x2e   : > { %p150_p12 = scmp.lt.s32.totalorder %s510_s14, 3  ;;  %p729_p1 = scmp.ge.s32.totalorder %s510_s14, 1 }
  0x30   : > { %p151_p3 = pnand %p729_p1, %p150_p12 }
  0x31   : > { %s645_s3 = sand.u32 (!%p151_p3), 1, %s494_s10  }
  0x32   : > { %154 = sbr.rel (%p151_p3) target bundleno = 85 (0x55), region = 28  ;;  %s323_s7 = sshll.u32 (!%p151_p3), %s645_s3, 5 }
  0x33   : > { %s157_s8 = scalar_lea.sflag (!%p151_p3), [#allocation3], %s645_s3  ;;  %s160_s15 = scalar_lea.vmem (!%p151_p3), [#allocation2], %s323_s7 }
  0x39   : > { %481 = dma.done.wait (%p580_p8), %s157_s8, 512  }
  0x3a   : > { %483 = vsyncadd (%p580_p8), %s157_s8, 4294966784  ;;  %v189_v0 = vld [vmem:[%s721_s1] sm:$0xff]  ;;  %v190_v2 = vld [vmem:[%s721_s1 + $0x8] sm:$0xff]  ;;  %s180_s16 = scalar_lea.vmem [#allocation5], %s323_s7  ;;  %s331_s21 = sshll.u32 %s502_s12, 9 }
  0x3b   : > { %v193_v1 = vld [vmem:[%s160_s15] sm:$0xff]  ;;  %s226_s18 = sshll.u32 %s180_s16, 4  ;;  %v194_v4 = vld [vmem:[%s160_s15 + $0x8] sm:$0xff]  ;;  %v191_v5 = vld [vmem:[%s721_s1 + $0x10] sm:$0xff]  ;;  %s671_s12 = scalar_lea.hbm %s722_s2, %s331_s21  ;;  %s666_s18 = int_to_ptr.vmem [resolvable:$true] %s226_s18 }
  0x3c   : > { %v197_v3 = vmul.f32 16.0, %v193_v1  ;;  %v195_v6 = vld [vmem:[%s160_s15 + $0x10] sm:$0xff]  ;;  %v198_v7 = vmul.f32 16.0, %v194_v4  ;;  %v192_v9 = vld [vmem:[%s721_s1 + $0x18] sm:$0xff]  ;;  %s210_s29 = scalar_lea.sflag [#allocation4], %s645_s3  ;;  %s428_s7 = scalar_lea.vmem %s666_s18, 512 }
  0x3d   : > { %v199_v8 = vmul.f32 16.0, %v195_v6  ;;  %v196_v10 = vld [vmem:[%s160_s15 + $0x18] sm:$0xff]  ;;  %p429_p8 = scmp.ne.s32.totalorder %s666_s18, %s428_s7  ;;  %p730_p9 = scmp.ne.s32.totalorder %s726_s22, 0 }
  0x3e   : > { %v201_v11 = vadd.f32 %v197_v3, %v189_v0  ;;  %v200_v12 = vmul.f32 16.0, %v196_v10  ;;  %v202_v13 = vadd.f32 %v198_v7, %v190_v2  ;;  %s515_s8 = smov [#allocation5]  }
  0x3f   : > { %v203_v14 = vadd.f32 %v199_v8, %v191_v5  ;;  %p430_p11 = pnand %p429_p8, %p730_p9  ;;  %s432_s15 = sshll.u32 %s515_s8, 4  ;;  %s433_s15 = int_to_ptr.vmem [resolvable:$false] %s432_s15 }
  0x40   : > { %205 = vst [vmem:[%s180_s16] sm:$0xff] %v201_v11  ;;  %v204_v15 = vadd.f32 %v200_v12, %v192_v9  ;;  %206 = vst [vmem:[%s180_s16 + $0x8] sm:$0xff] %v202_v13  ;;  %s434_s5 = scalar_lea.vmem %s433_s15, 1024  ;;  %p435_p6 = scmp.lt.s32.totalorder %s666_s18, %s433_s15 }
  0x41   : > { %207 = vst [vmem:[%s180_s16 + $0x10] sm:$0xff] %v203_v14  ;;  %p431_p0 = pneg %p430_p11  ;;  %p436_p13 = scmp.lt.s32.totalorder %s434_s5, %s428_s7 }
  0x42   : > { %208 = vst [vmem:[%s180_s16 + $0x18] sm:$0xff] %v204_v15 }
  0x43   : > { %p437_p2 = por %p436_p13, %p435_p6 }
  0x45   : > { %p438_p5 = pnand %p437_p2, %p431_p0 }
  0x47   : > { %441 = shalt.err (!%p438_p5)
}
  0x48   : > { %s442_s30 = scalar_lea.hbm %s671_s12, 512  ;;  %s446_s16 = scalar_lea.hbm %s722_s2, 1024 }
  0x49   : > { %p443_p4 = scmp.ne.s32.totalorder %s671_s12, %s442_s30  ;;  %p447_p12 = scmp.lt.u32.totalorder %s671_s12, %s722_s2 }
  0x4a   : > { %p448_p1 = scmp.lt.u32.totalorder %s446_s16, %s442_s30  ;;  %p450_p8 = scmp.lt.u32.totalorder %s442_s30, %s671_s12 }
  0x4b   : > { %p444_p7 = pnand %p443_p4, %p730_p9 }
  0x4c   : > { %p449_p3 = por %p448_p1, %p447_p12 }
  0x4d   : > { %p445_p10 = pneg %p444_p7 }
  0x4e   : > { %p451_p11 = por %p450_p8, %p449_p3 }
  0x50   : > { %p452_p0 = pnand %p451_p11, %p445_p10 }
  0x52   : > { %455 = shalt.err (!%p452_p0)
}
  0x53   : > { %s516_s21 = smov 256   ;;  %s517_s25 = smov 16  }
  0x54   : > { %334 = dma.vmem_to_hbm [thread:$0]  (%p730_p9), %s666_s18, 512, %s671_s12, %s210_s29, %s516_s21, %s516_s21, %s517_s25  }
  0x55 PF: > { %s241_s26 = sand.u32 1, %s490_s9   ;;  %p731_p6 = scmp.ne.s32.totalorder %s727_s24, 0 }
  0x56   : > { %p732_p13 = scmp.ge.s32.totalorder %s510_s14, 2  ;;  %s242_s27 = scalar_lea.sflag [#allocation4], %s241_s26 }
  0x58   : > { %p341_p2 = pnand %p732_p13, %p731_p6 }
  0x5a   : > { %485 = dma.done.wait (!%p341_p2), %s242_s27, 512  }
  0x5b   : > { %487 = vsyncadd (!%p341_p2), %s242_s27, 4294966784  ;;  %s18_s14 = sadd.s32 1, %s510_s14   ;;  %s733_s9 = smov %s494_s10 }
  0x5c   : > { %p15_p5 = scmp.ge.s32.totalorder %s18_s14, 4   ;;  %s734_s10 = smov %s498_s11 }
  0x5d   : > { %s735_s11 = smov %s589_s23  ;;  %s736_s12 = smov %s506_s13 }
  0x5e   : > { %s737_s13 = smov %s739_s17  ;;  %17 = sbr.rel (!%p15_p5) target bundleno = 6 (0x6), region = 74 }
  0x65   :  { %247 = vsyncpa [#allocation3], 1 }
  0x66   :  { %249 = vsyncpa [#allocation3 + $0x1], 1 }
  0x67   :  { %250 = vsyncpa [#allocation4], 1 }
  0x68   :  { %252 = vsyncpa [#allocation4 + $0x1], 1 }

</bundles_post_ra>
